<compile_context>
chip_gen: v7x
topology: tpu7x:2x2x1
jax: 0.10.0
libtpu: 0.0.40
codegen_flags: <defaults>
</compile_context>

<pallas_src>
import math
from functools import partial

import jax
import jax.numpy as jnp
from jax.experimental import pallas as pl
from jax.experimental.pallas import tpu as pltpu


_LANE = 128

# murmur3 fmix32 constants, written as signed-int32 two's-complement values so
# the whole hash stays in portable int32 math (wraps mod 2^32, same bits).
_GOLDEN = 0x9E3779B9 - (1 << 32)
_MIX1 = 0x85EBCA6B - (1 << 32)
_MIX2 = 0xC2B2AE35 - (1 << 32)


def _round_up(x, m):
    return ((x + m - 1) // m) * m


def _sublane_multiple(dtype):
    # rows-per-sublane packing: f32 -> 8, bf16 -> 16, int8/fp8 -> 32.
    return {4: 8, 2: 16, 1: 32}[jnp.dtype(dtype).itemsize]


def _lsr(x, k):
    # logical shift right on int32: arithmetic shift + mask of the sign fill.
    return (x >> k) & jnp.int32((1 << (32 - k)) - 1)


def _uniform24(row, col, width, seed):
    """24-bit uniform ints, a pure function of (seed, row, col).  int32 only."""
    x = row * jnp.int32(width) + col                 # element counter (wraps; fine)
    x = x ^ (seed * jnp.int32(_GOLDEN))              # decorrelate seeds
    x = x ^ _lsr(x, 16)
    x = x * jnp.int32(_MIX1)
    x = x ^ _lsr(x, 13)
    x = x * jnp.int32(_MIX2)
    x = x ^ _lsr(x, 16)
    return x & jnp.int32((1 << 24) - 1)              # non-negative 24-bit value


# ----------------------------------------------------------------------------
# non_linear=True: one row tile per grid step.
#   h = relu(cat(x1..x4) @ W1 + b1) ; h = dropout(h) ; z = h @ W2 + b2
# The concat never happens: four accumulating K=dim1 matmuls instead.
# ----------------------------------------------------------------------------
def _merge_nonlinear_kernel(seed_ref, x1_ref, x2_ref, x3_ref, x4_ref,
                            w1_ref, b1_ref, w2_ref, b2_ref, z_ref, *,
                            dropout_p, train, compute_dtype):
    cd = compute_dtype

    # f32 accumulation on the MXU; bias folded into the accumulator init.
    h = b1_ref[...]                                               # (1, d2p) f32
    for k, xr in enumerate((x1_ref, x2_ref, x3_ref, x4_ref)):
        h = h + jnp.dot(xr[...].astype(cd), w1_ref[k],
                        preferred_element_type=jnp.float32)
    h = jnp.maximum(h, 0.0)                                       # ReLU (f32, VPU)

    # Dropout math in compute_dtype (feedback #7): halves vreg pressure and
    # the second matmul consumes that dtype anyway.
    h = h.astype(cd)
    if train and dropout_p > 0.0:                                 # F.dropout, training
        if dropout_p >= 1.0:
            h = jnp.zeros_like(h)
        else:
            tr = h.shape[0]
            rows = jax.lax.broadcasted_iota(jnp.int32, h.shape, 0) \
                + pl.program_id(0) * tr                            # global row index
            cols = jax.lax.broadcasted_iota(jnp.int32, h.shape, 1)
            u24 = _uniform24(rows, cols, h.shape[1], seed_ref[0])
            # threshold = round(p * 2^24): realized drop prob differs from p
            # by < 2^-24 (negligible).
            thresh = jnp.int32(min(int(round(dropout_p * (1 << 24))), 1 << 24))
            keep = u24 >= thresh
            h = jnp.where(keep, h * (1.0 / (1.0 - dropout_p)), jnp.zeros_like(h))

    z = jnp.dot(h, w2_ref[...], preferred_element_type=jnp.float32) + b2_ref[...]
    z_ref[...] = z.astype(z_ref.dtype)


# ----------------------------------------------------------------------------
# non_linear=False:
#   x = cat([x1..x4], -2) ; z_walk = (x @ w + b).squeeze(-1)
#   z = z_walk.sum(-1, keepdim=True)
# ----------------------------------------------------------------------------
def _merge_linear_kernel(x_ref, w_ref, b_ref, zwalk_ref, z_ref):
    # x: (tb, W, D) ; w: (1, D) ; b: (1, 1)
    # TODO(synk): for dim1 >= 128 at production scale, reformulate as an MXU
    # dot_general and pad the z_walk out_spec to a 128-lane multiple.
    s = jnp.sum(x_ref[...] * w_ref[...][:, None, :], axis=-1) + b_ref[...]  # (tb, W)
    zwalk_ref[...] = s.astype(zwalk_ref.dtype)
    z_ref[...] = jnp.sum(s, axis=-1, keepdims=True).astype(z_ref.dtype)


class MergeLayer:
    """JAX/Pallas re-implementation of the PyTorch MergeLayer module.

    compute_dtype=jnp.bfloat16 is the recommended fast path on v6e/v7x
    (full-rate MXU, half the weight/activation/output HBM bytes; accumulation
    stays f32).  The default stays f32 to match the PyTorch reference numerics
    bit-for-bit-ish.
    """

    def __init__(self, dim1, dim2, dim3, non_linear=True, dropout=0.5,
                 compute_dtype=jnp.float32, row_tile=512, key=None):
        if key is None:
            key = jax.random.PRNGKey(0)
        self.dim1, self.dim2, self.dim3 = dim1, dim2, dim3
        self.non_linear = non_linear
        self.dropout = dropout
        self.compute_dtype = compute_dtype
        self.row_tile = row_tile              # <=512 keeps v5e's 16 MiB default safe
        self.training = False                 # eval: F.dropout is the identity

        k1, k2, k3, k4, k5, k6 = jax.random.split(key, 6)

        def xavier_normal(k, fan_in, fan_out):
            std = math.sqrt(2.0 / (fan_in + fan_out))
            return std * jax.random.normal(k, (fan_in, fan_out), jnp.float32)

        def bias_uniform(k, fan_in, fan_out):
            bound = 1.0 / math.sqrt(fan_in)
            return jax.random.uniform(k, (1, fan_out), jnp.float32,
                                      minval=-bound, maxval=bound)

        # fc1: Linear(dim1*4, dim2); fc2: Linear(dim2, dim3)  (f32 reference copies,
        # stored [in, out] i.e. transposed vs torch's [out, in]).
        self.w1 = xavier_normal(k1, dim1 * 4, dim2)
        self.b1 = bias_uniform(k2, dim1 * 4, dim2)
        self.w2 = xavier_normal(k3, dim2, dim3)
        self.b2 = bias_uniform(k4, dim2, dim3)

        # Lane-dense padded copies consumed by the kernel.  W1 is stored as a
        # (4, dim1, d2_pad) stack so the kernel indexes w1_ref[k] directly.
        self._d2_pad = _round_up(dim2, _LANE)
        self._d3_pad = _round_up(dim3, _LANE)
        w1s = jnp.zeros((4, dim1, self._d2_pad), jnp.float32)
        w1s = w1s.at[:, :, :dim2].set(self.w1.reshape(4, dim1, dim2))
        self._w1s = w1s.astype(compute_dtype)
        self._b1p = (jnp.zeros((1, self._d2_pad), jnp.float32)
                     .at[:, :dim2].set(self.b1))
        self._w2p = (jnp.zeros((self._d2_pad, self._d3_pad), jnp.float32)
                     .at[:dim2, :dim3].set(self.w2)).astype(compute_dtype)
        self._b2p = (jnp.zeros((1, self._d3_pad), jnp.float32)
                     .at[:, :dim3].set(self.b2))

        if not non_linear:
            assert dim1 == dim2 == dim3
            bound = 1.0 / math.sqrt(dim1)
            self.w = jax.random.uniform(k5, (1, dim1), jnp.float32,
                                        minval=-bound, maxval=bound)
            self.b = jax.random.uniform(k6, (1, 1), jnp.float32,
                                        minval=-bound, maxval=bound)

    # -------------------------------------------------------------- VMEM budget
    def _vmem_limit(self, tr, x_itemsize):
        cd_sz = jnp.dtype(self.compute_dtype).itemsize
        d1, d2p, d3p = self.dim1, self._d2_pad, self._d3_pad
        x_bytes = 2 * 4 * tr * d1 * x_itemsize                 # 4 inputs, 2 buffers
        w_bytes = 2 * ((4 * d1 * d2p + d2p * d3p) * cd_sz + (d2p + d3p) * 4)
        z_bytes = 2 * tr * d3p * cd_sz
        work = tr * d2p * (4 + cd_sz + 4)                      # f32 acc + cd h + i32 hash
        budget = int(1.2 * (x_bytes + w_bytes + z_bytes + work))
        return max(16 << 20, min(budget, 64 << 20))

    # ---------------------------------------------------------------- forward
    def __call__(self, x1, x2, x3, x4, seed=0):
        if self.non_linear:
            lead = x1.shape[:-1]
            rows = math.prod(lead)
            xs = [x.reshape(rows, self.dim1) for x in (x1, x2, x3, x4)]

            cd = self.compute_dtype
            sub = _sublane_multiple(cd)
            # Aim for >=2 grid steps so "parallel" can use both v7x TCs.
            tr = min(self.row_tile, max(sub, _round_up(pl.cdiv(rows, 2), sub)))
            grid = (pl.cdiv(rows, tr),)

            d1, d2p, d3p = self.dim1, self._d2_pad, self._d3_pad
            kernel = partial(_merge_nonlinear_kernel, dropout_p=self.dropout,
                             train=self.training, compute_dtype=cd)
            seed_arr = jnp.asarray([seed], dtype=jnp.int32)

            z_full = pl.pallas_call(
                kernel,
                # Output emitted in compute_dtype (bf16 halves the padded
                # writeback stream); wrapper slices + casts back to f32.
                out_shape=jax.ShapeDtypeStruct((rows, d3p), cd),
                grid_spec=pltpu.PrefetchScalarGridSpec(
                    num_scalar_prefetch=1,       # runtime dropout seed (SMEM)
                    grid=grid,
                    in_specs=[
                        # row tiles of the four (un-padded, un-concatenated) inputs
                        pl.BlockSpec((tr, d1), lambda i, s: (i, 0)),
                        pl.BlockSpec((tr, d1), lambda i, s: (i, 0)),
                        pl.BlockSpec((tr, d1), lambda i, s: (i, 0)),
                        pl.BlockSpec((tr, d1), lambda i, s: (i, 0)),
                        # grid-invariant VMEM-resident weights / biases
                        # (TODO(synk): pipeline_mode=pl.Buffered(1) once verified)
                        pl.BlockSpec((4, d1, d2p), lambda i, s: (0, 0, 0)),
                        pl.BlockSpec((1, d2p), lambda i, s: (0, 0)),
                        pl.BlockSpec((d2p, d3p), lambda i, s: (0, 0)),
                        pl.BlockSpec((1, d3p), lambda i, s: (0, 0)),
                    ],
                    out_specs=pl.BlockSpec((tr, d3p), lambda i, s: (i, 0)),
                ),
                compiler_params=pltpu.CompilerParams(
                    dimension_semantics=("parallel",),
                    vmem_limit_bytes=self._vmem_limit(tr, xs[0].dtype.itemsize)),
            )(seed_arr, *xs, self._w1s, self._b1p, self._w2p, self._b2p)

            z = (z_full[:, :self.dim3].astype(jnp.float32)
                 .reshape(lead + (self.dim3,)))
            return z, None
        else:
            # Tiny path; concat along the walk axis stays in the wrapper.
            # TODO(synk): at production batch, pass x1..x4 separately and use a
            # lane-dense (padded) z_walk out_spec.
            x = jnp.concatenate([x1, x2, x3, x4], axis=-2)      # (B, 4M, D)
            B, W, D = x.shape
            tb = min(128, max(8, _round_up(pl.cdiv(B, 2), 8)))
            grid = (pl.cdiv(B, tb),)
            z_walk, z = pl.pallas_call(
                _merge_linear_kernel,
                out_shape=(jax.ShapeDtypeStruct((B, W), jnp.float32),
                           jax.ShapeDtypeStruct((B, 1), jnp.float32)),
                grid=grid,
                in_specs=[
                    pl.BlockSpec((tb, W, D), lambda i: (i, 0, 0)),
                    pl.BlockSpec((1, D), lambda i: (0, 0)),
                    pl.BlockSpec((1, 1), lambda i: (0, 0)),
                ],
                out_specs=(pl.BlockSpec((tb, W), lambda i: (i, 0)),
                           pl.BlockSpec((tb, 1), lambda i: (i, 0))),
                compiler_params=pltpu.CompilerParams(
                    dimension_semantics=("parallel",)),
            )(x, self.w, self.b)
            return z, z_walk


# -------------------------------------------------------------------- checks
def _ref_nonlinear(layer, x1, x2, x3, x4):
    x = jnp.concatenate([x1, x2, x3, x4], axis=-1)
    h = jnp.maximum(x @ layer.w1 + layer.b1, 0.0)   # eval: dropout = identity
    return h @ layer.w2 + layer.b2


def _ref_linear(layer, x1, x2, x3, x4):
    x = jnp.concatenate([x1, x2, x3, x4], axis=-2)
    z_walk = jnp.squeeze(x @ layer.w.T + layer.b[0, 0], -1)
    return jnp.sum(z_walk, axis=-1, keepdims=True), z_walk


if __name__ == "__main__":
    key = jax.random.PRNGKey(0)
    k_in, k_p1, k_p2 = jax.random.split(key, 3)

    dim1 = dim2 = dim3 = 32

    # ---- non_linear=True branch: inputs are [batch, dim1] --------------
    batch = 8
    ks = jax.random.split(k_in, 8)
    x1, x2, x3, x4 = (jax.random.normal(ks[i], (batch, dim1), jnp.float32)
                      for i in range(4))

    # f32 compute path (matches the PyTorch module numerics).
    layer = MergeLayer(dim1, dim2, dim3, non_linear=True, key=k_p1)
    z, z_walk = layer(x1, x2, x3, x4)
    jax.block_until_ready(z)
    assert z.shape == (batch, dim3) and z_walk is None
    z_ref = _ref_nonlinear(layer, x1, x2, x3, x4)
    assert jnp.allclose(z, z_ref, atol=1e-4, rtol=1e-4)

    # bf16 fast path (v6e/v7x): bf16 MXU + bf16 output, f32 accumulation.
    layer_bf16 = MergeLayer(dim1, dim2, dim3, non_linear=True,
                            compute_dtype=jnp.bfloat16, key=k_p1)
    z_bf, _ = layer_bf16(x1, x2, x3, x4)
    jax.block_until_ready(z_bf)
    assert z_bf.shape == (batch, dim3)
    assert jnp.allclose(z_bf, z_ref, atol=1e-1, rtol=1e-1)

    # training-mode dropout: runtime seed, hash-based (tiling-invariant) mask.
    layer_tr = MergeLayer(dim1, dim2, dim3, non_linear=True, dropout=0.5,
                          key=k_p1)
    layer_tr.training = True
    z_a, _ = layer_tr(x1, x2, x3, x4, seed=123)
    z_a2, _ = layer_tr(x1, x2, x3, x4, seed=123)
    z_b, _ = layer_tr(x1, x2, x3, x4, seed=456)
    jax.block_until_ready((z_a, z_a2, z_b))
    assert z_a.shape == (batch, dim3)
    assert bool(jnp.all(jnp.isfinite(z_a)))
    assert bool(jnp.array_equal(z_a, z_a2))        # same seed -> same mask
    assert not bool(jnp.allclose(z_a, z_b))        # different seed -> different mask

    # ---- non_linear=False branch: inputs are [batch, n_walk, dim1] -----
    B, M = 2, 8
    y1, y2, y3, y4 = (jax.random.normal(ks[4 + i], (B, M, dim1), jnp.float32)
                      for i in range(4))
    layer_lin = MergeLayer(dim1, dim2, dim3, non_linear=False, key=k_p2)
    zl, zl_walk = layer_lin(y1, y2, y3, y4)
    jax.block_until_ready((zl, zl_walk))
    zr, zwr = _ref_linear(layer_lin, y1, y2, y3, y4)
    assert zl.shape == (B, 1) and zl_walk.shape == (B, 4 * M)
    assert jnp.allclose(zl_walk, zwr, atol=1e-4, rtol=1e-4)
    assert jnp.allclose(zl, zr, atol=1e-4, rtol=1e-4)

    print("KERNEL_OK")
</pallas_src>

<mosaic_0001>
module attributes {stable_mosaic.version = 11 : i64} {
  func.func @_merge_nonlinear_kernel(%arg0: i32, %arg1: memref<1xi32, #tpu.memory_space<smem>>, %arg2: memref<8x32xf32, #tpu.memory_space<vmem>>, %arg3: memref<8x32xf32, #tpu.memory_space<vmem>>, %arg4: memref<8x32xf32, #tpu.memory_space<vmem>>, %arg5: memref<8x32xf32, #tpu.memory_space<vmem>>, %arg6: memref<4x32x128xf32, #tpu.memory_space<vmem>>, %arg7: memref<1x128xf32, #tpu.memory_space<vmem>>, %arg8: memref<128x128xf32, #tpu.memory_space<vmem>>, %arg9: memref<1x128xf32, #tpu.memory_space<vmem>>, %arg10: memref<8x128xf32, #tpu.memory_space<vmem>>) attributes {dimension_semantics = [#tpu.dimension_semantics<parallel>], iteration_bounds = array<i64: 1>, scalar_prefetch = 1 : i64, scratch_operands = 0 : i64, tpu.core_type = #tpu.core_type<tc>, window_params = [{transform_indices = @transform_0, window_bounds = array<i64: 8, 32>}, {transform_indices = @transform_1, window_bounds = array<i64: 8, 32>}, {transform_indices = @transform_2, window_bounds = array<i64: 8, 32>}, {transform_indices = @transform_3, window_bounds = array<i64: 8, 32>}, {pipeline_mode = #tpu.pipeline_mode<synchronous>, transform_indices = @transform_4, window_bounds = array<i64: 4, 32, 128>}, {pipeline_mode = #tpu.pipeline_mode<synchronous>, transform_indices = @transform_5, window_bounds = array<i64: 1, 128>}, {pipeline_mode = #tpu.pipeline_mode<synchronous>, transform_indices = @transform_6, window_bounds = array<i64: 128, 128>}, {pipeline_mode = #tpu.pipeline_mode<synchronous>, transform_indices = @transform_7, window_bounds = array<i64: 1, 128>}, {transform_indices = @transform_8, window_bounds = array<i64: 8, 128>}]} {
    %c0 = arith.constant 0 : index
    %c0_0 = arith.constant 0 : index
    %0 = vector.load %arg7[%c0, %c0_0] : memref<1x128xf32, #tpu.memory_space<vmem>>, vector<1x128xf32>
    %c0_1 = arith.constant 0 : index
    %c0_2 = arith.constant 0 : index
    %1 = vector.load %arg2[%c0_1, %c0_2] : memref<8x32xf32, #tpu.memory_space<vmem>>, vector<8x32xf32>
    %c0_3 = arith.constant 0 : index
    %c0_4 = arith.constant 0 : index
    %c0_5 = arith.constant 0 : index
    %2 = vector.load %arg6[%c0_3, %c0_4, %c0_5] : memref<4x32x128xf32, #tpu.memory_space<vmem>>, vector<1x32x128xf32>
    %3 = vector.shape_cast %2 : vector<1x32x128xf32> to vector<32x128xf32>
    %cst = arith.constant dense<0.000000e+00> : vector<8x128xf32>
    %4 = tpu.matmul %1, %3, %cst {dimension_numbers = #tpu.dot_dimension_numbers<[1], [0], [0], [1], [0, 0, 1, 1], [], []>} : vector<8x32xf32>, vector<32x128xf32>, vector<8x128xf32> -> vector<8x128xf32>
    %5 = vector.broadcast %0 : vector<1x128xf32> to vector<8x128xf32>
    %6 = arith.addf %5, %4 : vector<8x128xf32>
    %c0_6 = arith.constant 0 : index
    %c0_7 = arith.constant 0 : index
    %7 = vector.load %arg3[%c0_6, %c0_7] : memref<8x32xf32, #tpu.memory_space<vmem>>, vector<8x32xf32>
    %c1 = arith.constant 1 : index
    %c0_8 = arith.constant 0 : index
    %c0_9 = arith.constant 0 : index
    %8 = vector.load %arg6[%c1, %c0_8, %c0_9] : memref<4x32x128xf32, #tpu.memory_space<vmem>>, vector<1x32x128xf32>
    %9 = vector.shape_cast %8 : vector<1x32x128xf32> to vector<32x128xf32>
    %cst_10 = arith.constant dense<0.000000e+00> : vector<8x128xf32>
    %10 = tpu.matmul %7, %9, %cst_10 {dimension_numbers = #tpu.dot_dimension_numbers<[1], [0], [0], [1], [0, 0, 1, 1], [], []>} : vector<8x32xf32>, vector<32x128xf32>, vector<8x128xf32> -> vector<8x128xf32>
    %11 = arith.addf %6, %10 : vector<8x128xf32>
    %c0_11 = arith.constant 0 : index
    %c0_12 = arith.constant 0 : index
    %12 = vector.load %arg4[%c0_11, %c0_12] : memref<8x32xf32, #tpu.memory_space<vmem>>, vector<8x32xf32>
    %c2 = arith.constant 2 : index
    %c0_13 = arith.constant 0 : index
    %c0_14 = arith.constant 0 : index
    %13 = vector.load %arg6[%c2, %c0_13, %c0_14] : memref<4x32x128xf32, #tpu.memory_space<vmem>>, vector<1x32x128xf32>
    %14 = vector.shape_cast %13 : vector<1x32x128xf32> to vector<32x128xf32>
    %cst_15 = arith.constant dense<0.000000e+00> : vector<8x128xf32>
    %15 = tpu.matmul %12, %14, %cst_15 {dimension_numbers = #tpu.dot_dimension_numbers<[1], [0], [0], [1], [0, 0, 1, 1], [], []>} : vector<8x32xf32>, vector<32x128xf32>, vector<8x128xf32> -> vector<8x128xf32>
    %16 = arith.addf %11, %15 : vector<8x128xf32>
    %c0_16 = arith.constant 0 : index
    %c0_17 = arith.constant 0 : index
    %17 = vector.load %arg5[%c0_16, %c0_17] : memref<8x32xf32, #tpu.memory_space<vmem>>, vector<8x32xf32>
    %c3 = arith.constant 3 : index
    %c0_18 = arith.constant 0 : index
    %c0_19 = arith.constant 0 : index
    %18 = vector.load %arg6[%c3, %c0_18, %c0_19] : memref<4x32x128xf32, #tpu.memory_space<vmem>>, vector<1x32x128xf32>
    %19 = vector.shape_cast %18 : vector<1x32x128xf32> to vector<32x128xf32>
    %cst_20 = arith.constant dense<0.000000e+00> : vector<8x128xf32>
    %20 = tpu.matmul %17, %19, %cst_20 {dimension_numbers = #tpu.dot_dimension_numbers<[1], [0], [0], [1], [0, 0, 1, 1], [], []>} : vector<8x32xf32>, vector<32x128xf32>, vector<8x128xf32> -> vector<8x128xf32>
    %21 = arith.addf %16, %20 : vector<8x128xf32>
    %cst_21 = arith.constant 0.000000e+00 : f32
    %22 = vector.broadcast %cst_21 : f32 to vector<8x128xf32>
    %23 = arith.maximumf %21, %22 : vector<8x128xf32>
    %c0_22 = arith.constant 0 : index
    %c0_23 = arith.constant 0 : index
    %24 = vector.load %arg8[%c0_22, %c0_23] : memref<128x128xf32, #tpu.memory_space<vmem>>, vector<128x128xf32>
    %cst_24 = arith.constant dense<0.000000e+00> : vector<8x128xf32>
    %25 = tpu.matmul %23, %24, %cst_24 {dimension_numbers = #tpu.dot_dimension_numbers<[1], [0], [0], [1], [0, 0, 1, 1], [], []>} : vector<8x128xf32>, vector<128x128xf32>, vector<8x128xf32> -> vector<8x128xf32>
    %c0_25 = arith.constant 0 : index
    %c0_26 = arith.constant 0 : index
    %26 = vector.load %arg9[%c0_25, %c0_26] : memref<1x128xf32, #tpu.memory_space<vmem>>, vector<1x128xf32>
    %27 = vector.broadcast %26 : vector<1x128xf32> to vector<8x128xf32>
    %28 = arith.addf %25, %27 : vector<8x128xf32>
    %c0_27 = arith.constant 0 : index
    %c0_28 = arith.constant 0 : index
    %29 = vector.load %arg10[%c0_27, %c0_28] : memref<8x128xf32, #tpu.memory_space<vmem>>, vector<8x128xf32>
    tpu.vector_store %arg10[%c0_27, %c0_28], %28 {strides = array<i32>} : memref<8x128xf32, #tpu.memory_space<vmem>>, vector<8x128xf32>,
    return
  }
  func.func @transform_0(%arg0: i32, %arg1: memref<1xi32, #tpu.memory_space<smem>>) -> (i32, i32) {
    %c0_i32 = arith.constant 0 : i32
    %c0_i32_0 = arith.constant 0 : i32
    return %arg0, %c0_i32 : i32, i32
  }
  func.func @transform_1(%arg0: i32, %arg1: memref<1xi32, #tpu.memory_space<smem>>) -> (i32, i32) {
    %c0_i32 = arith.constant 0 : i32
    %c0_i32_0 = arith.constant 0 : i32
    return %arg0, %c0_i32 : i32, i32
  }
  func.func @transform_2(%arg0: i32, %arg1: memref<1xi32, #tpu.memory_space<smem>>) -> (i32, i32) {
    %c0_i32 = arith.constant 0 : i32
    %c0_i32_0 = arith.constant 0 : i32
    return %arg0, %c0_i32 : i32, i32
  }
  func.func @transform_3(%arg0: i32, %arg1: memref<1xi32, #tpu.memory_space<smem>>) -> (i32, i32) {
    %c0_i32 = arith.constant 0 : i32
    %c0_i32_0 = arith.constant 0 : i32
    return %arg0, %c0_i32 : i32, i32
  }
  func.func @transform_4(%arg0: i32, %arg1: memref<1xi32, #tpu.memory_space<smem>>) -> (i32, i32, i32) {
    %c0_i32 = arith.constant 0 : i32
    %c0_i32_0 = arith.constant 0 : i32
    %c0_i32_1 = arith.constant 0 : i32
    %c0_i32_2 = arith.constant 0 : i32
    return %c0_i32, %c0_i32_0, %c0_i32_1 : i32, i32, i32
  }
  func.func @transform_5(%arg0: i32, %arg1: memref<1xi32, #tpu.memory_space<smem>>) -> (i32, i32) {
    %c0_i32 = arith.constant 0 : i32
    %c0_i32_0 = arith.constant 0 : i32
    %c0_i32_1 = arith.constant 0 : i32
    return %c0_i32, %c0_i32_0 : i32, i32
  }
  func.func @transform_6(%arg0: i32, %arg1: memref<1xi32, #tpu.memory_space<smem>>) -> (i32, i32) {
    %c0_i32 = arith.constant 0 : i32
    %c0_i32_0 = arith.constant 0 : i32
    %c0_i32_1 = arith.constant 0 : i32
    return %c0_i32, %c0_i32_0 : i32, i32
  }
  func.func @transform_7(%arg0: i32, %arg1: memref<1xi32, #tpu.memory_space<smem>>) -> (i32, i32) {
    %c0_i32 = arith.constant 0 : i32
    %c0_i32_0 = arith.constant 0 : i32
    %c0_i32_1 = arith.constant 0 : i32
    return %c0_i32, %c0_i32_0 : i32, i32
  }
  func.func @transform_8(%arg0: i32, %arg1: memref<1xi32, #tpu.memory_space<smem>>) -> (i32, i32) {
    %c0_i32 = arith.constant 0 : i32
    %c0_i32_0 = arith.constant 0 : i32
    return %arg0, %c0_i32 : i32, i32
  }
}

</mosaic_0001>

<bundles_post_ra>
// kernel: tpu_custom_call.1
= control target key start
LH: loop header
LB: loop body
LE: loop exit
PB: predicated region body
PF: predicated region fallthrough
CT: control target
= control target key end

     0   :  { %15 = vsyncpa [#allocation5], 0  ;;  %s1046_s0 = inlined_call_operand.<no memory space> [shape: s32[1], index: 0, kind: input, shape index: {}]   ;;  %s1047_s1 = inlined_call_operand.hbm [shape: f32[8,32], index: 1, kind: input, shape index: {}]   ;;  %s1048_s2 = inlined_call_operand.hbm [shape: f32[8,32], index: 2, kind: input, shape index: {}]   ;;  %s1049_s3 = inlined_call_operand.vmem [shape: f32[8,32], index: 3, kind: input, shape index: {}]   ;;  %s1050_s4 = inlined_call_operand.hbm [shape: f32[8,32], index: 4, kind: input, shape index: {}]   ;;  %s1051_s5 = inlined_call_operand.hbm [shape: f32[4,32,128], index: 5, kind: input, shape index: {}]   ;;  %s1052_s6 = inlined_call_operand.vmem [shape: f32[1,128], index: 6, kind: input, shape index: {}]   ;;  %s1053_s7 = inlined_call_operand.hbm [shape: f32[128,128], index: 7, kind: input, shape index: {}]   ;;  %s1054_s8 = inlined_call_operand.vmem [shape: f32[1,128], index: 8, kind: input, shape index: {}]   ;;  %s1055_s9 = inlined_call_operand.hbm [shape: f32[8,128], index: 9, kind: output, shape index: {}]  }
   0x1   :  { %16 = vsyncpa [#allocation8], 0 }
   0x2   :  { %17 = vsyncpa [#allocation11], 0 }
   0x3   :  { %18 = vsyncpa [#allocation6], 0  ;;  %s861_s29 = smov [#allocation7]   ;;  %s862_s10 = smov [#allocation10]  }
   0x4   :  { %s35_s30 = sshll.u32 %s861_s29, 4  ;;  %s56_s11 = sshll.u32 %s862_s10, 4  ;;  %s36_s30 = int_to_ptr.vmem [resolvable:$true] %s35_s30  ;;  %s922_s11 = int_to_ptr.vmem [resolvable:$true] %s56_s11 }
   0x5   :  { %s721_s14 = scalar_lea.hbm %s1048_s2, 128 }
   0x6   :  { %p722_p0 = scmp.ne.s32.totalorder %s1048_s2, %s721_s14  ;;  %p725_p1 = scmp.lt.u32.totalorder %s721_s14, %s1048_s2 }
   0x8   :  { %p727_p2 = pnand %p725_p1, %p722_p0 }
   0xa   :  { %730 = shalt.err (!%p727_p2)
}
   0xb   :  { %s731_s19 = scalar_lea.vmem %s36_s30, 128  ;;  %p736_p4 = scmp.lt.s32.totalorder %s36_s30, %s36_s30 }
   0xc   :  { %p732_p3 = scmp.ne.s32.totalorder %s36_s30, %s731_s19  ;;  %p737_p5 = scmp.lt.s32.totalorder %s731_s19, %s731_s19 }
   0xe   :  { %p738_p6 = por %p737_p5, %p736_p4 }
  0x10   :  { %p739_p7 = pnand %p738_p6, %p732_p3 }
  0x12   :  { %742 = shalt.err (!%p739_p7)
}
  0x13   :  { %38 = dma.hbm_to_vmem [thread:$0]  %s1048_s2, 128, %s36_s30, [#allocation8]  }
  0x14   :  { %s743_s24 = scalar_lea.hbm %s1051_s5, 2048 }
  0x15   :  { %p744_p8 = scmp.ne.s32.totalorder %s1051_s5, %s743_s24  ;;  %p747_p9 = scmp.lt.u32.totalorder %s743_s24, %s1051_s5 }
  0x17   :  { %p749_p10 = pnand %p747_p9, %p744_p8 }
  0x19   :  { %752 = shalt.err (!%p749_p10)
}
  0x1a   :  { %s753_s28 = scalar_lea.vmem %s922_s11, 2048  ;;  %p758_p12 = scmp.lt.s32.totalorder %s922_s11, %s922_s11 }
  0x1b   :  { %p754_p11 = scmp.ne.s32.totalorder %s922_s11, %s753_s28  ;;  %p759_p13 = scmp.lt.s32.totalorder %s753_s28, %s753_s28 }
  0x1d   :  { %p760_p0 = por %p759_p13, %p758_p12 }
  0x1f   :  { %p761_p1 = pnand %p760_p0, %p754_p11 }
  0x21   :  { %764 = shalt.err (!%p761_p1)
}
  0x22   :  { %s863_s2 = smov 128   ;;  %s864_s29 = smov 8  }
  0x23   :  { %62 = dma.hbm_to_vmem [thread:$0]  %s1051_s5, 2048, %s922_s11, [#allocation11], %s863_s2, %s863_s2, %s864_s29  }
  0x24   :  { %s865_s12 = smov [#allocation4]   ;;  %s866_s14 = smov [#allocation9]  }
  0x25   :  { %s25_s13 = sshll.u32 %s865_s12, 4  ;;  %s47_s15 = sshll.u32 %s866_s14, 4  ;;  %s26_s13 = int_to_ptr.vmem [resolvable:$true] %s25_s13  ;;  %s48_s15 = int_to_ptr.vmem [resolvable:$true] %s47_s15 }
  0x26   :  { %s765_s18 = scalar_lea.hbm %s1047_s1, 128 }
  0x27   :  { %p766_p2 = scmp.ne.s32.totalorder %s1047_s1, %s765_s18  ;;  %p769_p3 = scmp.lt.u32.totalorder %s765_s18, %s1047_s1 }
  0x29   :  { %p771_p4 = pnand %p769_p3, %p766_p2 }
  0x2b   :  { %774 = shalt.err (!%p771_p4)
}
  0x2c   :  { %s775_s5 = scalar_lea.vmem %s26_s13, 128  ;;  %p780_p6 = scmp.lt.s32.totalorder %s26_s13, %s26_s13 }
  0x2d   :  { %p776_p5 = scmp.ne.s32.totalorder %s26_s13, %s775_s5  ;;  %p781_p7 = scmp.lt.s32.totalorder %s775_s5, %s775_s5 }
  0x2f   :  { %p782_p8 = por %p781_p7, %p780_p6 }
  0x31   :  { %p783_p9 = pnand %p782_p8, %p776_p5 }
  0x33   :  { %786 = shalt.err (!%p783_p9)
}
  0x34   :  { %28 = dma.hbm_to_vmem [thread:$0]  %s1047_s1, 128, %s26_s13, [#allocation5]  }
  0x35   :  { %s787_s25 = scalar_lea.hbm %s1050_s4, 128 }
  0x36   :  { %p788_p10 = scmp.ne.s32.totalorder %s1050_s4, %s787_s25  ;;  %p791_p11 = scmp.lt.u32.totalorder %s787_s25, %s1050_s4 }
  0x38   :  { %p793_p12 = pnand %p791_p11, %p788_p10 }
  0x3a   :  { %796 = shalt.err (!%p793_p12)
}
  0x3b   :  { %s797_s10 = scalar_lea.vmem %s48_s15, 128  ;;  %p802_p0 = scmp.lt.s32.totalorder %s48_s15, %s48_s15 }
  0x3c   :  { %p798_p13 = scmp.ne.s32.totalorder %s48_s15, %s797_s10  ;;  %p803_p1 = scmp.lt.s32.totalorder %s797_s10, %s797_s10 }
  0x3e   :  { %p804_p2 = por %p803_p1, %p802_p0 }
  0x40   :  { %p805_p3 = pnand %p804_p2, %p798_p13 }
  0x42   :  { %808 = shalt.err (!%p805_p3)
}
  0x43   :  { %50 = dma.hbm_to_vmem [thread:$0]  %s1050_s4, 128, %s48_s15, [#allocation8]  }
  0x44   :  { %s867_s13 = smov [#allocation12]   ;;  %s809_s18 = scalar_lea.hbm %s1053_s7, 2048 }
  0x45   :  { %s70_s14 = sshll.u32 %s867_s13, 4  ;;  %p810_p4 = scmp.ne.s32.totalorder %s1053_s7, %s809_s18  ;;  %s71_s14 = int_to_ptr.vmem [resolvable:$true] %s70_s14 }
  0x46   :  { %p813_p5 = scmp.lt.u32.totalorder %s809_s18, %s1053_s7 }
  0x48   :  { %p815_p6 = pnand %p813_p5, %p810_p4 }
  0x4a   :  { %818 = shalt.err (!%p815_p6)
}
  0x4b   :  { %s819_s5 = scalar_lea.vmem %s71_s14, 2048  ;;  %p824_p8 = scmp.lt.s32.totalorder %s71_s14, %s71_s14 }
  0x4c   :  { %p820_p7 = scmp.ne.s32.totalorder %s71_s14, %s819_s5  ;;  %p825_p9 = scmp.lt.s32.totalorder %s819_s5, %s819_s5 }
  0x4e   :  { %p826_p10 = por %p825_p9, %p824_p8 }
  0x50   :  { %p827_p11 = pnand %p826_p10, %p820_p7 }
  0x52   :  { %830 = shalt.err (!%p827_p11)
}
  0x53   :  { %76 = dma.hbm_to_vmem [thread:$0]  %s1053_s7, 2048, %s71_s14, [#allocation11], %s863_s2, %s863_s2, %s864_s29  }
  0x54   :  { %853 = dma.done.wait [#allocation5], 128  }
  0x55   :  { %854 = vsyncadd [#allocation5], 4294967168 }
  0x56   :  { %855 = dma.done.wait [#allocation8], 256  }
  0x57   :  { %856 = vsyncadd [#allocation8], 4294967040 }
  0x58   :  { %857 = dma.done.wait [#allocation11], 4096  }
  0x59   :  { %858 = vsyncadd [#allocation11], 4294963200  ;;  %v868_v0 = vmov 0.0|0.0   ;;  %vm869_vm0 = vmmov 0   ;;  %v870_v1 = vmov 0.0   ;;  %v96_v2 = vld [vmem:[#allocation10] sm:$0xff] }
  0x5a   :  { %655 = vmatprep.subr.bf16.mxu0 %v868_v0  ;;  %584 = vmatprep.mubr.msk.f32.mxu0 %vm869_vm0, %v870_v1  ;;  %v97_v3 = vld [vmem:[#allocation10 + $0x8] sm:$0xff]  ;;  %v98_v4 = vld [vmem:[#allocation10 + $0x10] sm:$0xff]  ;;  %v99_v6 = vld [vmem:[#allocation10 + $0x18] sm:$0xff]  ;;  %vm100_vm1 = vcmask 261120   ;;  %s871_s24 = smov [#allocation13]  }
  0x5b   :  { %679 = vmatprep.subr.bf16.mxu1 %v868_v0  ;;  %652 = vmatprep.mubr.msk.f32.mxu1 %vm869_vm0, %v870_v1  ;;  %v656_v5 = vpack.c.bf16 %v97_v3, %v96_v2  ;;  %v659_v7 = vpack.c.bf16 %v99_v6, %v98_v4  ;;  %v183_v8 = vld [vmem:[#allocation10 + $0x20] sm:$0xff]  ;;  %v184_v9 = vld [vmem:[#allocation10 + $0x28] sm:$0xff]  ;;  %v424_v14 = vld [vmem:[#allocation12 + $0x10] sm:$0xff]  ;;  %s522_s0 = sshll.u32 %s871_s24, 4  ;;  %s523_s0 = int_to_ptr.vmem [resolvable:$true] %s522_s0 }
  0x5c   :  { %v95_v10 = vld [vmem:[#allocation4] sm:$0xff]  ;;  %v422_v11 = vld [vmem:[#allocation12] sm:$0xff]  ;;  %v662_v12 = vpack.c.bf16 %v184_v9, %v183_v8  ;;  %v425_v15 = vld [vmem:[#allocation12 + $0x18] sm:$0xff]  ;;  %s831_s25 = scalar_lea.vmem %s523_s0, 128  ;;  %p836_p13 = scmp.lt.s32.totalorder %s523_s0, %s523_s0 }
  0x5d   :  { %657 = vmatpush3.bf16.msra.mxu0 %v656_v5  ;;  %v423_v13 = vld [vmem:[#allocation12 + $0x8] sm:$0xff]  ;;  %v185_v16 = vld [vmem:[#allocation10 + $0x30] sm:$0xff]  ;;  %v186_v17 = vld [vmem:[#allocation10 + $0x38] sm:$0xff]  ;;  %v683_v19 = vpack.c.bf16 %v425_v15, %v424_v14  ;;  %p832_p12 = scmp.ne.s32.totalorder %s523_s0, %s831_s25  ;;  %p837_p0 = scmp.lt.s32.totalorder %s831_s25, %s831_s25 }
  0x5e   :  { %658 = vmatprep.subr.bf16.mxu0 %v868_v0  ;;  %v680_v18 = vpack.c.bf16 %v423_v13, %v422_v11  ;;  %v665_v20 = vpack.c.bf16 %v186_v17, %v185_v16  ;;  %v426_v21 = vld [vmem:[#allocation12 + $0x20] sm:$0xff]  ;;  %v427_v22 = vld [vmem:[#allocation12 + $0x28] sm:$0xff]  ;;  %v181_v26 = vld [vmem:[#allocation7] sm:$0xff] }
  0x5f   :  { %v263_v23 = vld [vmem:[#allocation10 + $0x40] sm:$0xff]  ;;  %v264_v24 = vld [vmem:[#allocation10 + $0x48] sm:$0xff]  ;;  %v686_v25 = vpack.c.bf16 %v427_v22, %v426_v21  ;;  %v428_v28 = vld [vmem:[#allocation12 + $0x30] sm:$0xff]  ;;  %p838_p1 = por %p837_p0, %p836_p13 }
  0x60   :  { %681 = vmatpush3.bf16.msra.mxu1 %v680_v18  ;;  %v668_v27 = vpack.c.bf16 %v264_v24, %v263_v23  ;;  %v429_v29 = vld [vmem:[#allocation12 + $0x38] sm:$0xff]  ;;  %v265_v30 = vld [vmem:[#allocation10 + $0x50] sm:$0xff]  ;;  %v430_v34 = vld [vmem:[#allocation12 + $0x40] sm:$0xff] }
  0x61   :  { %660 = vmatpush3.bf16.msra.mxu0 %v659_v7  ;;  %682 = vmatprep.subr.bf16.mxu1 %v868_v0  ;;  %v266_v31 = vld [vmem:[#allocation10 + $0x58] sm:$0xff]  ;;  %v689_v32 = vpack.c.bf16 %v429_v29, %v428_v28  ;;  %v431_v35 = vld [vmem:[#allocation12 + $0x48] sm:$0xff]  ;;  %v343_v36 = vld [vmem:[#allocation10 + $0x60] sm:$0xff]  ;;  %p839_p2 = pnand %p838_p1, %p832_p12 }
  0x62   :  { %661 = vmatprep.subr.bf16.mxu0 %v868_v0  ;;  %v671_v33 = vpack.c.bf16 %v266_v31, %v265_v30  ;;  %v344_v37 = vld [vmem:[#allocation10 + $0x68] sm:$0xff]  ;;  %v692_v38 = vpack.c.bf16 %v431_v35, %v430_v34  ;;  %v432_v41 = vld [vmem:[#allocation12 + $0x50] sm:$0xff]  ;;  %v433_v42 = vld [vmem:[#allocation12 + $0x58] sm:$0xff] }
  0x63   :  { %v261_v39 = vld [vmem:[%s1049_s3] sm:$0xff]  ;;  %v674_v40 = vpack.c.bf16 %v344_v37, %v343_v36  ;;  %v345_v43 = vld [vmem:[#allocation10 + $0x70] sm:$0xff]  ;;  %v346_v44 = vld [vmem:[#allocation10 + $0x78] sm:$0xff]  ;;  %v695_v45 = vpack.c.bf16 %v433_v42, %v432_v41 }
  0x64   :  { %585 = vmatmul.mubr.msk.f32.vlgmr.msra.gmra.mrb[0].mxu0 %vm100_vm1, %v95_v10  ;;  %684 = vmatpush3.bf16.msra.mxu1 %v683_v19  ;;  %v677_v46 = vpack.c.bf16 %v346_v44, %v345_v43  ;;  %v434_v47 = vld [vmem:[#allocation12 + $0x60] sm:$0xff]  ;;  %v435_v48 = vld [vmem:[#allocation12 + $0x68] sm:$0xff]  ;;  %v341_v50 = vld [vmem:[#allocation9] sm:$0xff] }
  0x65   :  { %663 = vmatpush3.bf16.msra.mxu0 %v662_v12  ;;  %595 = vmatprep.mubr.msk.f32.mxu0 %vm869_vm0, %v870_v1  ;;  %v698_v49 = vpack.c.bf16 %v435_v48, %v434_v47  ;;  %v436_v51 = vld [vmem:[#allocation12 + $0x70] sm:$0xff]  ;;  %v437_v52 = vld [vmem:[#allocation12 + $0x78] sm:$0xff]  ;;  %v534_v54 = vld [vmem:[%s1052_s6] ss:$0 sm:$0xff] }
  0x66   :  { %664 = vmatprep.subr.bf16.mxu0 %v868_v0  ;;  %685 = vmatprep.subr.bf16.mxu1 %v868_v0  ;;  %v701_v53 = vpack.c.bf16 %v437_v52, %v436_v51  ;;  %v538_v59 = vld [vmem:[%s1054_s8] ss:$0 sm:$0xff] }
  0x68   :  { %687 = vmatpush3.bf16.msra.mxu1 %v686_v25 }
  0x69   :  { %666 = vmatpush3.bf16.msra.mxu0 %v665_v20  ;;  %688 = vmatprep.subr.bf16.mxu1 %v868_v0 }
  0x6a   :  { %667 = vmatprep.subr.bf16.mxu0 %v868_v0 }
  0x6c   :  { %596 = vmatmul.mubr.msk.f32.vlgmr.msra.gmra.mrb[0].mxu0 %vm100_vm1, %v181_v26  ;;  %690 = vmatpush3.bf16.msra.mxu1 %v689_v32 }
  0x6d   :  { %669 = vmatpush3.bf16.msra.mxu0 %v668_v27  ;;  %606 = vmatprep.mubr.msk.f32.mxu0 %vm869_vm0, %v870_v1 }
  0x6e   :  { %670 = vmatprep.subr.bf16.mxu0 %v868_v0  ;;  %691 = vmatprep.subr.bf16.mxu1 %v868_v0 }
  0x70   :  { %693 = vmatpush3.bf16.msra.mxu1 %v692_v38 }
  0x71   :  { %672 = vmatpush3.bf16.msra.mxu0 %v671_v33  ;;  %694 = vmatprep.subr.bf16.mxu1 %v868_v0 }
  0x72   :  { %673 = vmatprep.subr.bf16.mxu0 %v868_v0 }
  0x74   :  { %607 = vmatmul.mubr.msk.f32.vlgmr.msra.gmra.mrb[0].mxu0 %vm100_vm1, %v261_v39  ;;  %696 = vmatpush3.bf16.msra.mxu1 %v695_v45 }
  0x75   :  { %675 = vmatpush3.bf16.msra.mxu0 %v674_v40  ;;  %617 = vmatprep.mubr.msk.f32.mxu0 %vm869_vm0, %v870_v1 }
  0x76   :  { %676 = vmatprep.subr.bf16.mxu0 %v868_v0  ;;  %697 = vmatprep.subr.bf16.mxu1 %v868_v0 }
  0x78   :  { %699 = vmatpush3.bf16.msra.mxu1 %v698_v49 }
  0x79   :  { %678 = vmatpush3.bf16.msra.mxu0 %v677_v46  ;;  %700 = vmatprep.subr.bf16.mxu1 %v868_v0 }
  0x7c   :  { %618 = vmatmul.mubr.msk.f32.vlgmr.msra.gmra.mrb[0].mxu0 %vm100_vm1, %v341_v50  ;;  %702 = vmatpush3.bf16.msra.mxu1 %v701_v53 }
 0x14f   :  { %v416_v55 = vpop.f32.mrb[0].mxu0 }
 0x150   :  { %v703_v56 = vadd.f32 %v534_v54, %v416_v55  ;;  %v619_v57 = vpop.f32.mrb[1].mxu0 }
 0x152   :  { %v421_v58 = vmax.f32 %v703_v56, 0.0 }
 0x154   :  { %653 = vmatmul.mubr.f32.vlgmr.msra.gmra.mrb[0].mxu1 %v421_v58 }
 0x227   :  { %v511_v60 = vpop.f32.mrb[0].mxu1 }
 0x228   :  { %v512_v61 = vadd.f32 %v538_v59, %v511_v60  ;;  %v654_v62 = vpop.f32.mrb[1].mxu1 }
 0x22a   :  { %515 = vst [vmem:[#allocation13] sm:$0xff] %v512_v61 }
 0x22b   :  { %842 = shalt.err (!%p839_p2)
}
 0x22c   :  { %s843_s27 = scalar_lea.hbm %s1055_s9, 128 }
 0x22d   :  { %p844_p3 = scmp.ne.s32.totalorder %s1055_s9, %s843_s27  ;;  %p847_p4 = scmp.lt.u32.totalorder %s843_s27, %s1055_s9 }
 0x22f   :  { %p849_p5 = pnand %p847_p4, %p844_p3 }
 0x231   :  { %852 = shalt.err (!%p849_p5)
}
 0x232   :  { %525 = dma.vmem_to_hbm [thread:$0]  %s523_s0, 128, %s1055_s9, [#allocation6]  }
 0x233   :  { %859 = dma.done.wait [#allocation6], 128  }
 0x234   :  { %860 = vsyncadd [#allocation6], 4294967168 }
 0x235   :  { %529 = vsyncpa [#allocation5], 1 }
 0x236   :  { %530 = vsyncpa [#allocation8], 1 }
 0x237   :  { %531 = vsyncpa [#allocation11], 1 }
 0x238   :  { %532 = vsyncpa [#allocation6], 1 }

</bundles_post_ra>
